<compile_context>
chip_gen: v7x
topology: tpu7x:2x2x1
jax: 0.10.0
libtpu: 0.0.40
codegen_flags: <defaults>
</compile_context>

<pallas_src>
import math

import jax
import jax.numpy as jnp
import numpy as np
from jax.experimental import pallas as pl
from jax.experimental.pallas import tpu as pltpu

# ----------------------------- config (small) -------------------------------
B = 2            # batch
S = 8            # sequence length
E = 32           # embedding size
EXPANSION = 4
FF = EXPANSION * E   # feed-forward hidden size = 128 (lane-dense)


def _gelu_tanh(x):
    # GELU(approximate='tanh'), computed in f32 on the VPU/EUP.
    c = math.sqrt(2.0 / math.pi)
    return 0.5 * x * (1.0 + jnp.tanh(c * (x + 0.044715 * x * x * x)))


# ------------------------------ the kernel ----------------------------------
def ff_kernel(x_ref, w1_ref, b1_ref, w2_ref, b2_ref, o_ref):
    x = x_ref[...]                                              # (T, E)  bf16
    # MXU: bf16 operands, f32 accumulation.
    h = jnp.dot(x, w1_ref[...], preferred_element_type=jnp.float32)   # (T, FF) f32
    # Elementwise (bias add + GELU) in f32 (v5e has no bf16 VPU/EUP).
    h = _gelu_tanh(h + b1_ref[...])                             # (T, FF) f32
    o = jnp.dot(h.astype(jnp.bfloat16), w2_ref[...],
                preferred_element_type=jnp.float32) + b2_ref[...]      # (T, E) f32
    o_ref[...] = o
    # TODO(synk): nn.Dropout is identity in eval mode; stochastic dropout not applied.


# ------------------------------ the wrapper ---------------------------------
def feed_forward(x, params):
    b, s, e = x.shape
    ff = params["w1"].shape[1]
    t = b * s

    # Fold batch & sequence into the token/row axis and cast the matmul operand
    # to bf16 outside the kernel (free XLA reshape/convert; halves the x DMA).
    x2 = x.reshape(t, e).astype(jnp.bfloat16)

    bytes_accessed = (
        t * e * 2            # x (bf16)
        + e * ff * 2         # W1 (bf16)
        + ff * 4             # b1 (f32)
        + ff * e * 2         # W2 (bf16)
        + e * 4              # b2 (f32)
        + t * e * 4          # out (f32)
    )

    out2 = pl.pallas_call(
        ff_kernel,
        out_shape=jax.ShapeDtypeStruct((t, e), jnp.float32),
        grid_spec=pltpu.PrefetchScalarGridSpec(
            num_scalar_prefetch=0,
            grid=(1,),                                   # single step: weights DMA'd once
            in_specs=[
                pl.BlockSpec((t, e), lambda i: (0, 0)),      # tokens (bf16)
                pl.BlockSpec((e, ff), lambda i: (0, 0)),     # W1 [E, FF] (bf16)
                pl.BlockSpec((1, ff), lambda i: (0, 0)),     # b1 (f32)
                pl.BlockSpec((ff, e), lambda i: (0, 0)),     # W2 [FF, E] (bf16)
                pl.BlockSpec((1, e), lambda i: (0, 0)),      # b2 (f32)
            ],
            out_specs=pl.BlockSpec((t, e), lambda i: (0, 0)),
        ),
        compiler_params=pltpu.CompilerParams(
            dimension_semantics=("arbitrary",),
        ),
        cost_estimate=pl.CostEstimate(
            flops=4 * t * e * ff,          # two matmuls: 2*T*E*FF each
            transcendentals=t * ff,        # one tanh per hidden activation
            bytes_accessed=bytes_accessed,
        ),
    )(x2, params["w1"], params["b1"], params["w2"], params["b2"])

    return out2.reshape(b, s, e)


# --------------------------- pure-JAX references ------------------------------
def feed_forward_reference_f32(x, p32):
    # Full-f32 semantics of the PyTorch module (eval mode).
    h = _gelu_tanh(x @ p32["w1"] + p32["b1"][0])
    return h @ p32["w2"] + p32["b2"][0]


def feed_forward_reference_mixed(x, p):
    # Same mixed-precision recipe as the kernel (bf16 operands, f32 accum/elementwise).
    b, s, e = x.shape
    xb = x.reshape(b * s, e).astype(jnp.bfloat16)
    h = jnp.dot(xb, p["w1"], preferred_element_type=jnp.float32) + p["b1"]
    h = _gelu_tanh(h)
    o = jnp.dot(h.astype(jnp.bfloat16), p["w2"],
                preferred_element_type=jnp.float32) + p["b2"]
    return o.reshape(b, s, e)


# ------------------------------- init & run ----------------------------------
def init_params(key):
    k1, k2 = jax.random.split(key)

    def lin(k, fan_in, fan_out):
        # Matches torch.nn.Linear default init: U(-1/sqrt(fan_in), 1/sqrt(fan_in)).
        kw, kb = jax.random.split(k)
        bound = 1.0 / math.sqrt(fan_in)
        w = jax.random.uniform(kw, (fan_in, fan_out), jnp.float32, -bound, bound)
        b = jax.random.uniform(kb, (1, fan_out), jnp.float32, -bound, bound)
        return w, b

    w1, b1 = lin(k1, E, FF)
    w2, b2 = lin(k2, FF, E)
    params_f32 = dict(w1=w1, b1=b1, w2=w2, b2=b2)
    # Weights stored in bf16 (half-width HBM->VMEM DMA); biases stay f32.
    params = dict(
        w1=w1.astype(jnp.bfloat16), b1=b1,
        w2=w2.astype(jnp.bfloat16), b2=b2,
    )
    return params, params_f32


if __name__ == "__main__":
    key = jax.random.PRNGKey(0)
    kx, kp = jax.random.split(key)
    x = jax.random.normal(kx, (B, S, E), jnp.float32)
    params, params_f32 = init_params(kp)

    out = jax.block_until_ready(feed_forward(x, params))

    # 1) Tight check against a pure-JAX reference using the identical
    #    mixed-precision recipe (validates the kernel math itself).
    ref_mixed = jax.block_until_ready(feed_forward_reference_mixed(x, params))
    np.testing.assert_allclose(np.asarray(out), np.asarray(ref_mixed),
                               atol=1e-4, rtol=1e-4)

    # 2) Loose check against the full-f32 module semantics
    #    (bf16 matmul operands introduce ~1e-2-level differences).
    ref_f32 = jax.block_until_ready(feed_forward_reference_f32(x, params_f32))
    np.testing.assert_allclose(np.asarray(out), np.asarray(ref_f32),
                               atol=5e-2, rtol=5e-2)

    print("KERNEL_OK")
</pallas_src>

<mosaic_0001>
module attributes {stable_mosaic.version = 11 : i64} {
  func.func @ff_kernel(%arg0: i32, %arg1: memref<16x32xbf16, #tpu.memory_space<vmem>>, %arg2: memref<32x128xbf16, #tpu.memory_space<vmem>>, %arg3: memref<1x128xf32, #tpu.memory_space<vmem>>, %arg4: memref<128x32xbf16, #tpu.memory_space<vmem>>, %arg5: memref<1x32xf32, #tpu.memory_space<vmem>>, %arg6: memref<16x32xf32, #tpu.memory_space<vmem>>) attributes {dimension_semantics = [#tpu.dimension_semantics<arbitrary>], iteration_bounds = array<i64: 1>, scalar_prefetch = 0 : i64, scratch_operands = 0 : i64, tpu.core_type = #tpu.core_type<tc>, window_params = [{pipeline_mode = #tpu.pipeline_mode<synchronous>, transform_indices = @transform_0, window_bounds = array<i64: 16, 32>}, {pipeline_mode = #tpu.pipeline_mode<synchronous>, transform_indices = @transform_1, window_bounds = array<i64: 32, 128>}, {pipeline_mode = #tpu.pipeline_mode<synchronous>, transform_indices = @transform_2, window_bounds = array<i64: 1, 128>}, {pipeline_mode = #tpu.pipeline_mode<synchronous>, transform_indices = @transform_3, window_bounds = array<i64: 128, 32>}, {pipeline_mode = #tpu.pipeline_mode<synchronous>, transform_indices = @transform_4, window_bounds = array<i64: 1, 32>}, {pipeline_mode = #tpu.pipeline_mode<synchronous>, transform_indices = @transform_5, window_bounds = array<i64: 16, 32>}]} {
    %c0 = arith.constant 0 : index
    %c0_0 = arith.constant 0 : index
    %0 = vector.load %arg1[%c0, %c0_0] : memref<16x32xbf16, #tpu.memory_space<vmem>>, vector<16x32xbf16>
    %c0_1 = arith.constant 0 : index
    %c0_2 = arith.constant 0 : index
    %1 = vector.load %arg2[%c0_1, %c0_2] : memref<32x128xbf16, #tpu.memory_space<vmem>>, vector<32x128xbf16>
    %cst = arith.constant dense<0.000000e+00> : vector<16x128xf32>
    %2 = tpu.matmul %0, %1, %cst {dimension_numbers = #tpu.dot_dimension_numbers<[1], [0], [0], [1], [0, 0, 1, 1], [], []>} : vector<16x32xbf16>, vector<32x128xbf16>, vector<16x128xf32> -> vector<16x128xf32>
    %c0_3 = arith.constant 0 : index
    %c0_4 = arith.constant 0 : index
    %3 = vector.load %arg3[%c0_3, %c0_4] : memref<1x128xf32, #tpu.memory_space<vmem>>, vector<1x128xf32>
    %4 = vector.broadcast %3 : vector<1x128xf32> to vector<16x128xf32>
    %5 = arith.addf %2, %4 : vector<16x128xf32>
    %cst_5 = arith.constant 5.000000e-01 : f32
    %6 = vector.broadcast %cst_5 : f32 to vector<16x128xf32>
    %7 = arith.mulf %6, %5 : vector<16x128xf32>
    %cst_6 = arith.constant 4.471500e-02 : f32
    %8 = vector.broadcast %cst_6 : f32 to vector<16x128xf32>
    %9 = arith.mulf %8, %5 : vector<16x128xf32>
    %10 = arith.mulf %9, %5 : vector<16x128xf32>
    %11 = arith.mulf %10, %5 : vector<16x128xf32>
    %12 = arith.addf %5, %11 : vector<16x128xf32>
    %cst_7 = arith.constant 0.797884583 : f32
    %13 = vector.broadcast %cst_7 : f32 to vector<16x128xf32>
    %14 = arith.mulf %13, %12 : vector<16x128xf32>
    %15 = math.tanh %14 : vector<16x128xf32>
    %cst_8 = arith.constant 1.000000e+00 : f32
    %16 = vector.broadcast %cst_8 : f32 to vector<16x128xf32>
    %17 = arith.addf %16, %15 : vector<16x128xf32>
    %18 = arith.mulf %7, %17 : vector<16x128xf32>
    %19 = arith.truncf %18 : vector<16x128xf32> to vector<16x128xbf16>
    %c0_9 = arith.constant 0 : index
    %c0_10 = arith.constant 0 : index
    %20 = vector.load %arg4[%c0_9, %c0_10] : memref<128x32xbf16, #tpu.memory_space<vmem>>, vector<128x32xbf16>
    %cst_11 = arith.constant dense<0.000000e+00> : vector<16x32xf32>
    %21 = tpu.matmul %19, %20, %cst_11 {dimension_numbers = #tpu.dot_dimension_numbers<[1], [0], [0], [1], [0, 0, 1, 1], [], []>} : vector<16x128xbf16>, vector<128x32xbf16>, vector<16x32xf32> -> vector<16x32xf32>
    %c0_12 = arith.constant 0 : index
    %c0_13 = arith.constant 0 : index
    %22 = vector.load %arg5[%c0_12, %c0_13] : memref<1x32xf32, #tpu.memory_space<vmem>>, vector<1x32xf32>
    %23 = vector.broadcast %22 : vector<1x32xf32> to vector<16x32xf32>
    %24 = arith.addf %21, %23 : vector<16x32xf32>
    %c0_14 = arith.constant 0 : index
    %c0_15 = arith.constant 0 : index
    %25 = vector.load %arg6[%c0_14, %c0_15] : memref<16x32xf32, #tpu.memory_space<vmem>>, vector<16x32xf32>
    tpu.vector_store %arg6[%c0_14, %c0_15], %24 {strides = array<i32>} : memref<16x32xf32, #tpu.memory_space<vmem>>, vector<16x32xf32>,
    return
  }
  func.func @transform_0(%arg0: i32) -> (i32, i32) {
    %c0_i32 = arith.constant 0 : i32
    %c0_i32_0 = arith.constant 0 : i32
    %c0_i32_1 = arith.constant 0 : i32
    return %c0_i32, %c0_i32_0 : i32, i32
  }
  func.func @transform_1(%arg0: i32) -> (i32, i32) {
    %c0_i32 = arith.constant 0 : i32
    %c0_i32_0 = arith.constant 0 : i32
    %c0_i32_1 = arith.constant 0 : i32
    return %c0_i32, %c0_i32_0 : i32, i32
  }
  func.func @transform_2(%arg0: i32) -> (i32, i32) {
    %c0_i32 = arith.constant 0 : i32
    %c0_i32_0 = arith.constant 0 : i32
    %c0_i32_1 = arith.constant 0 : i32
    return %c0_i32, %c0_i32_0 : i32, i32
  }
  func.func @transform_3(%arg0: i32) -> (i32, i32) {
    %c0_i32 = arith.constant 0 : i32
    %c0_i32_0 = arith.constant 0 : i32
    %c0_i32_1 = arith.constant 0 : i32
    return %c0_i32, %c0_i32_0 : i32, i32
  }
  func.func @transform_4(%arg0: i32) -> (i32, i32) {
    %c0_i32 = arith.constant 0 : i32
    %c0_i32_0 = arith.constant 0 : i32
    %c0_i32_1 = arith.constant 0 : i32
    return %c0_i32, %c0_i32_0 : i32, i32
  }
  func.func @transform_5(%arg0: i32) -> (i32, i32) {
    %c0_i32 = arith.constant 0 : i32
    %c0_i32_0 = arith.constant 0 : i32
    %c0_i32_1 = arith.constant 0 : i32
    return %c0_i32, %c0_i32_0 : i32, i32
  }
}

</mosaic_0001>

<bundles_post_ra>
// kernel: tpu_custom_call.1
= control target key start
LH: loop header
LB: loop body
LE: loop exit
PB: predicated region body
PF: predicated region fallthrough
CT: control target
= control target key end

     0   :  { %v344_v1 = vmov 0.0   ;;  %vm345_vm0 = vmmov 0   ;;  %vm52_vm1 = vcmask 261120   ;;  %s433_s0 = inlined_call_operand.vmem [shape: bf16[16,32], index: 0, kind: input, shape index: {}]   ;;  %s434_s1 = inlined_call_operand.vmem [shape: bf16[32,128], index: 1, kind: input, shape index: {}]   ;;  %s435_s2 = inlined_call_operand.vmem [shape: f32[1,128], index: 2, kind: input, shape index: {}]   ;;  %s436_s3 = inlined_call_operand.vmem [shape: bf16[128,32], index: 3, kind: input, shape index: {}]   ;;  %s437_s4 = inlined_call_operand.vmem [shape: f32[1,32], index: 4, kind: input, shape index: {}]   ;;  %s438_s5 = inlined_call_operand.hbm [shape: f32[16,32], index: 5, kind: output, shape index: {}]  }
   0x1   :  { %v305_v0 = vld [vmem:[%s434_s1] sm:$0xff]   ;;  %272 = vmatprep.subr.bf16.mxu0 %v344_v1  ;;  %280 = vmatprep.subr.bf16.mxu1 %v344_v1  ;;  %v306_v2 = vld [vmem:[%s434_s1 + $0x8] sm:$0xff]  }
   0x2   :  { %273 = vmatpush3.bf16.msra.mxu0 %v305_v0  ;;  %276 = vmatprep.mubr.msk.bf16.mxu0 %vm345_vm0, %v344_v1  ;;  %v307_v3 = vld [vmem:[%s433_s0] sm:$0xff]  }
   0x3   :  { %274 = vmatprep.subr.bf16.mxu0 %v344_v1  ;;  %296 = vmatprep.mubr.msk.bf16.mxu1 %vm345_vm0, %v344_v1 }
   0x6   :  { %275 = vmatpush3.bf16.msra.mxu0 %v306_v2 }
   0x7   :  { %10 = vsyncpa [#allocation3], 0  ;;  %v308_v4 = vld [vmem:[%s436_s3] sm:$0xff]   ;;  %v309_v5 = vld [vmem:[%s436_s3 + $0x8] sm:$0xff]   ;;  %s346_s15 = smov [#allocation2]  }
   0x8   :  { %281 = vmatpush3.bf16.msra.mxu1 %v308_v4  ;;  %v310_v6 = vld [vmem:[%s436_s3 + $0x10] sm:$0xff]   ;;  %v311_v7 = vld [vmem:[%s436_s3 + $0x18] sm:$0xff]   ;;  %v312_v8 = vld [vmem:[%s436_s3 + $0x20] sm:$0xff]   ;;  %s235_s16 = sshll.u32 %s346_s15, 4  ;;  %s236_s16 = int_to_ptr.vmem [resolvable:$true] %s235_s16 }
   0x9   :  { %277 = vmatmul.mubr.msk.bf16.vlgmr.msra.gmra.mrb[0].mxu0 %vm52_vm1, %v307_v3  ;;  %282 = vmatprep.subr.bf16.mxu1 %v344_v1  ;;  %v313_v9 = vld [vmem:[%s436_s3 + $0x28] sm:$0xff]   ;;  %v314_v10 = vld [vmem:[%s436_s3 + $0x30] sm:$0xff]   ;;  %v315_v11 = vld [vmem:[%s436_s3 + $0x38] sm:$0xff]   ;;  %s320_s17 = scalar_lea.vmem %s236_s16, 256  ;;  %p325_p1 = scmp.lt.s32.totalorder %s236_s16, %s236_s16 }
   0xa   :  { %v246_v12 = vld [vmem:[%s435_s2] ss:$0 sm:$0xff]  ;;  %p321_p0 = scmp.ne.s32.totalorder %s236_s16, %s320_s17  ;;  %p326_p2 = scmp.lt.s32.totalorder %s320_s17, %s320_s17 }
   0xb   :  { %v251_v38 = vld [vmem:[%s437_s4] ss:$0 sm:$0xff] }
   0xc   :  { %283 = vmatpush3.bf16.msra.mxu1 %v309_v5  ;;  %p327_p3 = por %p326_p2, %p325_p1 }
   0xd   :  { %284 = vmatprep.subr.bf16.mxu1 %v344_v1 }
   0xe   :  { %p328_p4 = pnand %p327_p3, %p321_p0 }
  0x10   :  { %285 = vmatpush3.bf16.msra.mxu1 %v310_v6 }
  0x11   :  { %286 = vmatprep.subr.bf16.mxu1 %v344_v1 }
  0x14   :  { %287 = vmatpush3.bf16.msra.mxu1 %v311_v7 }
  0x15   :  { %288 = vmatprep.subr.bf16.mxu1 %v344_v1 }
  0x18   :  { %289 = vmatpush3.bf16.msra.mxu1 %v312_v8 }
  0x19   :  { %290 = vmatprep.subr.bf16.mxu1 %v344_v1 }
  0x1c   :  { %291 = vmatpush3.bf16.msra.mxu1 %v313_v9 }
  0x1d   :  { %292 = vmatprep.subr.bf16.mxu1 %v344_v1 }
  0x20   :  { %293 = vmatpush3.bf16.msra.mxu1 %v314_v10 }
  0x21   :  { %294 = vmatprep.subr.bf16.mxu1 %v344_v1 }
  0x24   :  { %295 = vmatpush3.bf16.msra.mxu1 %v315_v11 }
  0xdc   :  { %v90_v13 = vpop.f32.mrb[0].mxu0 }
  0xdd   :  { %v91_v14 = vadd.f32 %v246_v12, %v90_v13  ;;  %v278_v15 = vpop.f32.mrb[1].mxu0 }
  0xde   :  { %v93_v16 = vpop.f32.mrb[2].mxu0 }
  0xdf   :  { %v99_v17 = vmul.f32 0.044715, %v91_v14  ;;  %v94_v18 = vadd.f32 %v246_v12, %v93_v16  ;;  %v279_v19 = vpop.f32.mrb[3].mxu0  ;;  %v97_v32 = vmul.f32 0.5, %v91_v14 }
  0xe1   :  { %v101_v20 = vmul.f32 %v99_v17, %v91_v14  ;;  %v100_v21 = vmul.f32 0.044715, %v94_v18  ;;  %v98_v33 = vmul.f32 0.5, %v94_v18 }
  0xe3   :  { %v103_v22 = vmul.f32 %v101_v20, %v91_v14  ;;  %v102_v23 = vmul.f32 %v100_v21, %v94_v18 }
  0xe5   :  { %v104_v24 = vmul.f32 %v102_v23, %v94_v18  ;;  %v105_v25 = vadd.f32 %v103_v22, %v91_v14 }
  0xe7   :  { %v106_v26 = vadd.f32 %v104_v24, %v94_v18  ;;  %v107_v27 = vmul.f32 0.7978846, %v105_v25 }
  0xe9   :  { %v108_v28 = vmul.f32 0.7978846, %v106_v26  ;;  %316 = vtanh.f32 %v107_v27 }
  0xeb   :  { %318 = vtanh.f32 %v108_v28 }
  0xf3   :  { %v317_v29 = vpop.eup %316 }
  0xf4   :  { %v111_v30 = vadd.f32 1.0, %v317_v29 }
  0xf5   :  { %v319_v31 = vpop.eup %318 }
  0xf6   :  { %v112_v34 = vadd.f32 1.0, %v319_v31  ;;  %v113_v35 = vmul.f32 %v111_v30, %v97_v32 }
  0xf8   :  { %v114_v36 = vmul.f32 %v112_v34, %v98_v33 }
  0xfa   :  { %v115_v37 = vpack.c.bf16 %v114_v36, %v113_v35 }
  0xfc   :  { %297 = vmatmul.mubr.bf16.vlgmr.msra.gmra.mrb[0].mxu1 %v115_v37 }
 0x1cf   :  { %v221_v39 = vpop.f32.mrb[0].mxu1 }
 0x1d0   :  { %v222_v40 = vadd.f32 %v251_v38, %v221_v39  ;;  %v298_v41 = vpop.f32.mrb[1].mxu1 }
 0x1d1   :  { %v224_v42 = vpop.f32.mrb[2].mxu1 }
 0x1d2   :  { %228 = vst.msk [vmem:[#allocation2] sm:$0xff] %vm52_vm1, %v222_v40  ;;  %v225_v43 = vadd.f32 %v251_v38, %v224_v42  ;;  %v299_v44 = vpop.f32.mrb[3].mxu1 }
 0x1d4   :  { %229 = vst.msk [vmem:[#allocation2 + $0x8] sm:$0xff] %vm52_vm1, %v225_v43 }
 0x1d5   :  { %331 = shalt.err (!%p328_p4)
}
 0x1d6   :  { %s332_s19 = scalar_lea.hbm %s438_s5, 256 }
 0x1d7   :  { %p333_p5 = scmp.ne.s32.totalorder %s438_s5, %s332_s19  ;;  %p336_p6 = scmp.lt.u32.totalorder %s332_s19, %s438_s5 }
 0x1d9   :  { %p338_p7 = pnand %p336_p6, %p333_p5 }
 0x1db   :  { %341 = shalt.err (!%p338_p7)
}
 0x1dc   :  { %s347_s24 = smov 128   ;;  %s348_s25 = smov 8  }
 0x1dd   :  { %241 = dma.vmem_to_hbm [thread:$0]  %s236_s16, 256, %s438_s5, [#allocation3], %s347_s24, %s347_s24, %s348_s25  }
 0x1de   :  { %342 = dma.done.wait [#allocation3], 256  }
 0x1df   :  { %343 = vsyncadd [#allocation3], 4294967040 }
 0x1e0   :  { %245 = vsyncpa [#allocation3], 1 }

</bundles_post_ra>
